<compile_context>
chip_gen: v6e
topology: v6e:2x2x1
jax: 0.10.0
libtpu: 0.0.40
codegen_flags: <defaults>
</compile_context>

<pallas_src>
import functools
import math

import jax
import jax.numpy as jnp
from jax.experimental import pallas as pl
from jax.experimental.pallas import tpu as pltpu


# ----------------------------- small helpers ----------------------------------

_GATE_MULT = {"RNN_TANH": 1, "RNN_RELU": 1, "GRU": 3, "LSTM": 4}


def _round_up(n, m):
    return ((n + m - 1) // m) * m


def _pad2d(a, rows, cols):
    pr, pc = rows - a.shape[0], cols - a.shape[1]
    if pr == 0 and pc == 0:
        return a
    return jnp.pad(a, ((0, pr), (0, pc)))


def _sigmoid(x):
    # exp -> EUP, approx reciprocal -> EUP slot; keeps the gate tail off the VALU
    # divide path (jax.nn.sigmoid lowers to a divide).
    return pl.reciprocal(1.0 + jnp.exp(-x), approx=True)


# ----------------------------- kernels -----------------------------------------

def _rnn_kernel(x_ref, hx_ref, wih_ref, whh_ref, b_ref, out_ref, *, act, cdt):
    g = (b_ref[...]
         + jnp.dot(x_ref[...].astype(cdt), wih_ref[...],
                   preferred_element_type=jnp.float32)
         + jnp.dot(hx_ref[...].astype(cdt), whh_ref[...],
                   preferred_element_type=jnp.float32))
    y = jnp.tanh(g) if act == "tanh" else jnp.maximum(g, 0.0)
    out_ref[...] = y.astype(out_ref.dtype)


def _gru_kernel(x_ref, hx_ref, hxt_ref, wih_ref, whh_ref, bih_ref, bhh_ref,
                out_ref, *, tn, cdt):
    # Per hidden tile the gate columns are [r | z | n] (width tn each).
    gi = bih_ref[...] + jnp.dot(x_ref[...].astype(cdt), wih_ref[...],
                                preferred_element_type=jnp.float32)
    gh = bhh_ref[...] + jnp.dot(hx_ref[...].astype(cdt), whh_ref[...],
                                preferred_element_type=jnp.float32)
    r = _sigmoid(gi[:, :tn] + gh[:, :tn])
    z = _sigmoid(gi[:, tn:2 * tn] + gh[:, tn:2 * tn])
    n = jnp.tanh(gi[:, 2 * tn:] + r * gh[:, 2 * tn:])
    hx = hxt_ref[...]                       # f32 (tb, tn) slice of the hidden state
    out_ref[...] = (n + z * (hx - n)).astype(out_ref.dtype)


def _lstm_kernel(x_ref, hx_ref, cx_ref, wih_ref, whh_ref, b_ref,
                 h_out_ref, c_out_ref, *, tn, cdt):
    # Per hidden tile the gate columns are [i | f | g | o] (width tn each).
    g = (b_ref[...]
         + jnp.dot(x_ref[...].astype(cdt), wih_ref[...],
                   preferred_element_type=jnp.float32)
         + jnp.dot(hx_ref[...].astype(cdt), whh_ref[...],
                   preferred_element_type=jnp.float32))
    i_g = _sigmoid(g[:, :tn])
    f_g = _sigmoid(g[:, tn:2 * tn])
    c_g = jnp.tanh(g[:, 2 * tn:3 * tn])
    o_g = _sigmoid(g[:, 3 * tn:])
    c_new = f_g * cx_ref[...] + i_g * c_g           # cx stays f32
    h_out_ref[...] = (o_g * jnp.tanh(c_new)).astype(h_out_ref.dtype)
    c_out_ref[...] = c_new.astype(c_out_ref.dtype)


# ----------------------------- parameter prep ----------------------------------

def init_params(key, input_size, hidden_size, mode="RNN_TANH"):
    """Mirrors reset_parameters: uniform(-stdv, stdv); masks default to ones."""
    mode = mode.upper()
    gate_size = _GATE_MULT[mode] * hidden_size
    stdv = 1.0 / math.sqrt(hidden_size)
    k1, k2, k3, k4 = jax.random.split(key, 4)
    return dict(
        weight_ih=jax.random.uniform(k1, (gate_size, input_size), jnp.float32, -stdv, stdv),
        weight_hh=jax.random.uniform(k2, (gate_size, hidden_size), jnp.float32, -stdv, stdv),
        bias_ih=jax.random.uniform(k3, (gate_size,), jnp.float32, -stdv, stdv),
        bias_hh=jax.random.uniform(k4, (gate_size,), jnp.float32, -stdv, stdv),
        mask_i2h=jnp.ones((gate_size, input_size), jnp.bool_),
        mask_h2h=jnp.ones((gate_size, hidden_size), jnp.bool_),
    )


def _choose_tn(H_pad, ng, input_size):
    # Largest 128-multiple gate-slab width that divides H_pad, keeps >=2 hidden
    # tiles when possible (v7x: 2 TCs shard the 'parallel' axes), and keeps the
    # double-buffered weight tiles within a few MiB of VMEM.
    tn = 128
    for cand in (512, 256):
        if H_pad % cand == 0 and H_pad // cand >= 2:
            tn = cand
            break
    while tn > 128 and 2 * (input_size + H_pad) * ng * tn * 2 > 16 * 1024 * 1024:
        tn //= 2
    return tn


def _pad_and_regroup_cols(a2d, ng, H, H_pad, tn):
    """(rows, ng*H) gate-major columns -> (rows, ng*H_pad) grouped per hidden tile.

    For hidden tile j, output columns [j*ng*tn, (j+1)*ng*tn) hold
    [gate0_j | gate1_j | ...] so in-kernel gate slices are 128-lane aligned.
    """
    rows = a2d.shape[0]
    a = a2d.reshape(rows, ng, H)
    if H_pad != H:
        a = jnp.pad(a, ((0, 0), (0, 0), (0, H_pad - H)))
    nj = H_pad // tn
    return a.reshape(rows, ng, nj, tn).transpose(0, 2, 1, 3).reshape(rows, ng * H_pad)


def prepare_params(params, mode, *, compute_dtype=jnp.bfloat16):
    """Fold masks into weights, transpose to K-major, pad H to 128, regroup gates.

    Call once per mask/weight update (i.e. whenever set_*_mask would be called).
    """
    mode = mode.upper()
    if mode not in _GATE_MULT:
        raise ValueError(f"Unrecognized mode: '{mode}'")
    ng = _GATE_MULT[mode]
    I = params["weight_ih"].shape[1]
    H = params["weight_hh"].shape[1]
    H_pad = _round_up(H, 128)
    tn = _choose_tn(H_pad, ng, I)

    wih_t = (params["weight_ih"].astype(jnp.float32)
             * params["mask_i2h"].astype(jnp.float32)).T              # (I, ng*H)
    whh_t = (params["weight_hh"].astype(jnp.float32)
             * params["mask_h2h"].astype(jnp.float32)).T              # (H, ng*H)
    whh_t = jnp.pad(whh_t, ((0, H_pad - H), (0, 0)))                  # (H_pad, ng*H)

    wih = _pad_and_regroup_cols(wih_t, ng, H, H_pad, tn).astype(compute_dtype)
    whh = _pad_and_regroup_cols(whh_t, ng, H, H_pad, tn).astype(compute_dtype)

    bih = params["bias_ih"].astype(jnp.float32).reshape(1, ng * H)
    bhh = params["bias_hh"].astype(jnp.float32).reshape(1, ng * H)
    if mode == "GRU":
        # GRU applies bias_hh to the n gate BEFORE the reset multiply -> keep split.
        biases = (_pad_and_regroup_cols(bih, ng, H, H_pad, tn),
                  _pad_and_regroup_cols(bhh, ng, H, H_pad, tn))
    else:
        biases = (_pad_and_regroup_cols(bih + bhh, ng, H, H_pad, tn),)

    return dict(mode=mode, ng=ng, tn=tn, hidden=H, hidden_pad=H_pad,
                input_size=I, wih=wih, whh=whh, biases=biases,
                compute_dtype=compute_dtype)


# ----------------------------- forward ------------------------------------------

def masked_recurrent_forward(prep, x, hx, *, h_dtype=jnp.bfloat16,
                             vmem_limit_bytes=48 * 1024 * 1024):
    """One step of the masked recurrent cell.

    x: (B, input_size); hx: (B, H) -- or (hx, cx) tuple for LSTM.
    Returns (B, H) in `h_dtype` (bf16 by default), or (h, c_f32) for LSTM.
    """
    mode, ng, tn = prep["mode"], prep["ng"], prep["tn"]
    H, H_pad, I = prep["hidden"], prep["hidden_pad"], prep["input_size"]
    cdt = prep["compute_dtype"]
    cx = None
    if mode == "LSTM":
        hx, cx = hx

    B = x.shape[0]
    B_pad = _round_up(B, 8)
    x_p = _pad2d(x, B_pad, I)
    hx_p = _pad2d(hx.astype(jnp.float32), B_pad, H_pad)   # carried state stays f32
    if mode == "LSTM":
        cx_p = _pad2d(cx.astype(jnp.float32), B_pad, H_pad)

    nj = H_pad // tn
    in_itemsize = x_p.dtype.itemsize
    cdt_size = jnp.dtype(cdt).itemsize
    h_size = jnp.dtype(h_dtype).itemsize

    def _vmem_estimate(tb):
        act = 2 * tb * I * in_itemsize + 2 * tb * H_pad * 4        # x, hx streams
        wts = 2 * (I + H_pad) * ng * tn * cdt_size                  # wih, whh streams
        state = 2 * tb * tn * 4 if mode in ("GRU", "LSTM") else 0   # hx-tile / cx
        outs = 2 * tb * tn * (h_size + (4 if mode == "LSTM" else 0))
        live = 2 * tb * ng * tn * 4                                 # gi/gh f32 temps
        return act + wts + state + outs + live

    # Batch tile: full batch so the weights cross HBM exactly once; shrink (in
    # multiples of 8 that divide B_pad) only if the VMEM budget forces it.
    tb = B_pad
    budget = int(0.75 * vmem_limit_bytes)
    while _vmem_estimate(tb) > budget and tb > 8:
        tb = next(t for t in range(tb - 8, 7, -8) if B_pad % t == 0)

    grid = (B_pad // tb, nj)

    x_spec = pl.BlockSpec((tb, I), lambda b, j: (b, 0))
    hx_spec = pl.BlockSpec((tb, H_pad), lambda b, j: (b, 0))
    wih_spec = pl.BlockSpec((I, ng * tn), lambda b, j: (0, j))
    whh_spec = pl.BlockSpec((H_pad, ng * tn), lambda b, j: (0, j))
    b_spec = pl.BlockSpec((1, ng * tn), lambda b, j: (0, j))
    tile_spec = pl.BlockSpec((tb, tn), lambda b, j: (b, j))

    cparams = pltpu.CompilerParams(
        # Both axes are independent -> shard across v7x's 2 TensorCores.
        dimension_semantics=("parallel", "parallel"),
        # Explicit, with headroom against v7x's 64 MiB VMEM per TC.
        vmem_limit_bytes=vmem_limit_bytes,
    )

    nb = B_pad // tb
    flops = 2 * B_pad * (I + H_pad) * ng * H_pad
    bytes_accessed = (x_p.size * in_itemsize + hx_p.size * 4
                      + nb * (prep["wih"].size + prep["whh"].size) * cdt_size
                      + B_pad * H_pad * h_size)
    if mode == "GRU":
        bytes_accessed += B_pad * H_pad * 4                   # hx re-read per tile
    if mode == "LSTM":
        bytes_accessed += 2 * B_pad * H_pad * 4               # cx in + c out (f32)
    cost = pl.CostEstimate(flops=int(flops),
                           transcendentals=int(B_pad * ng * H_pad),
                           bytes_accessed=int(bytes_accessed))

    if mode in ("RNN_TANH", "RNN_RELU"):
        kernel = functools.partial(_rnn_kernel,
                                   act="tanh" if mode == "RNN_TANH" else "relu",
                                   cdt=cdt)
        out = pl.pallas_call(
            kernel,
            out_shape=jax.ShapeDtypeStruct((B_pad, H_pad), h_dtype),
            grid=grid,
            in_specs=[x_spec, hx_spec, wih_spec, whh_spec, b_spec],
            out_specs=tile_spec,
            compiler_params=cparams,
            cost_estimate=cost,
        )(x_p, hx_p, prep["wih"], prep["whh"], prep["biases"][0])
        return out[:B, :H]

    if mode == "GRU":
        kernel = functools.partial(_gru_kernel, tn=tn, cdt=cdt)
        out = pl.pallas_call(
            kernel,
            out_shape=jax.ShapeDtypeStruct((B_pad, H_pad), h_dtype),
            grid=grid,
            in_specs=[x_spec, hx_spec, tile_spec, wih_spec, whh_spec, b_spec, b_spec],
            out_specs=tile_spec,
            compiler_params=cparams,
            cost_estimate=cost,
        )(x_p, hx_p, hx_p, prep["wih"], prep["whh"],
          prep["biases"][0], prep["biases"][1])
        return out[:B, :H]

    # LSTM
    kernel = functools.partial(_lstm_kernel, tn=tn, cdt=cdt)
    h_new, c_new = pl.pallas_call(
        kernel,
        out_shape=(jax.ShapeDtypeStruct((B_pad, H_pad), h_dtype),
                   jax.ShapeDtypeStruct((B_pad, H_pad), jnp.float32)),
        grid=grid,
        in_specs=[x_spec, hx_spec, tile_spec, wih_spec, whh_spec, b_spec],
        out_specs=(tile_spec, tile_spec),
        compiler_params=cparams,
        cost_estimate=cost,
    )(x_p, hx_p, cx_p, prep["wih"], prep["whh"], prep["biases"][0])
    return h_new[:B, :H], c_new[:B, :H]


# ----------------------------- reference (pure JAX, for validation) -------------

def _reference_forward(params, x, hx, mode):
    mode = mode.upper()
    if mode == "LSTM":
        hx, cx = hx
    mm = functools.partial(jnp.dot, precision=jax.lax.Precision.HIGHEST)
    wih = params["weight_ih"] * params["mask_i2h"].astype(jnp.float32)
    whh = params["weight_hh"] * params["mask_h2h"].astype(jnp.float32)
    igate = mm(x, wih.T) + params["bias_ih"]
    hgate = mm(hx, whh.T) + params["bias_hh"]
    if mode == "RNN_TANH":
        return jnp.tanh(igate + hgate)
    if mode == "RNN_RELU":
        return jax.nn.relu(igate + hgate)
    if mode == "GRU":
        i_r, i_i, i_n = jnp.split(igate, 3, axis=1)
        h_r, h_i, h_n = jnp.split(hgate, 3, axis=1)
        r = jax.nn.sigmoid(i_r + h_r)
        z = jax.nn.sigmoid(i_i + h_i)
        n = jnp.tanh(i_n + r * h_n)
        return n + z * (hx - n)
    gates = igate + hgate
    i_g, f_g, c_g, o_g = jnp.split(gates, 4, axis=1)
    cx_new = jax.nn.sigmoid(f_g) * cx + jax.nn.sigmoid(i_g) * jnp.tanh(c_g)
    return jax.nn.sigmoid(o_g) * jnp.tanh(cx_new), cx_new


# ----------------------------- main ----------------------------------------------

if __name__ == "__main__":
    # bf16 MXU inputs (f32 accumulation, f32 gate math) + bf16 h output + approx
    # reciprocal sigmoid -> a few e-3 of error vs the f32 reference.
    ATOL = RTOL = 3e-2
    key = jax.random.PRNGKey(0)

    def run_case(B, INPUT, HIDDEN, modes, salt):
        kx, kh, kc, kp = jax.random.split(jax.random.fold_in(key, salt), 4)
        x = jax.random.normal(kx, (B, INPUT), jnp.float32)
        h0 = jax.random.normal(kh, (B, HIDDEN), jnp.float32)
        c0 = jax.random.normal(kc, (B, HIDDEN), jnp.float32)
        for idx, mode in enumerate(modes):
            params = init_params(jax.random.fold_in(kp, idx), INPUT, HIDDEN, mode)
            # Exercise the masking path with non-trivial masks.
            km1, km2 = jax.random.split(jax.random.fold_in(kp, 100 + idx))
            params["mask_i2h"] = jax.random.bernoulli(km1, 0.8, params["mask_i2h"].shape)
            params["mask_h2h"] = jax.random.bernoulli(km2, 0.8, params["mask_h2h"].shape)

            hx_in = (h0, c0) if mode == "LSTM" else h0
            prep = prepare_params(params, mode, compute_dtype=jnp.bfloat16)
            out = masked_recurrent_forward(prep, x, hx_in)
            ref = _reference_forward(params, x, hx_in, mode)

            if mode == "LSTM":
                h_k, c_k = jax.block_until_ready(out)
                h_r, c_r = ref
                assert jnp.allclose(h_k.astype(jnp.float32), h_r, atol=ATOL, rtol=RTOL), mode
                assert jnp.allclose(c_k, c_r, atol=ATOL, rtol=RTOL), mode
            else:
                out_k = jax.block_until_ready(out)
                assert jnp.allclose(out_k.astype(jnp.float32), ref, atol=ATOL, rtol=RTOL), mode

    # Small aligned-ish case (H pads to one 128-wide tile), all four modes.
    run_case(8, 16, 32, ("RNN_TANH", "RNN_RELU", "GRU", "LSTM"), salt=0)
    # Unaligned case (B=10 -> 16, H=160 -> 256, two hidden tiles) for the gate-math modes.
    run_case(10, 24, 160, ("GRU", "LSTM"), salt=1)

    print("KERNEL_OK")
</pallas_src>

<mosaic_0001>
module attributes {stable_mosaic.version = 11 : i64} {
  func.func @_rnn_kernel(%arg0: i32, %arg1: i32, %arg2: memref<8x16xf32, #tpu.memory_space<vmem>>, %arg3: memref<8x128xf32, #tpu.memory_space<vmem>>, %arg4: memref<16x128xbf16, #tpu.memory_space<vmem>>, %arg5: memref<128x128xbf16, #tpu.memory_space<vmem>>, %arg6: memref<1x128xf32, #tpu.memory_space<vmem>>, %arg7: memref<8x128xbf16, #tpu.memory_space<vmem>>) attributes {dimension_semantics = [#tpu.dimension_semantics<parallel>, #tpu.dimension_semantics<parallel>], iteration_bounds = array<i64: 1, 1>, scalar_prefetch = 0 : i64, scratch_operands = 0 : i64, tpu.core_type = #tpu.core_type<tc>, window_params = [{transform_indices = @transform_0, window_bounds = array<i64: 8, 16>}, {transform_indices = @transform_1, window_bounds = array<i64: 8, 128>}, {transform_indices = @transform_2, window_bounds = array<i64: 16, 128>}, {transform_indices = @transform_3, window_bounds = array<i64: 128, 128>}, {transform_indices = @transform_4, window_bounds = array<i64: 1, 128>}, {transform_indices = @transform_5, window_bounds = array<i64: 8, 128>}]} {
    %c0 = arith.constant 0 : index
    %c0_0 = arith.constant 0 : index
    %0 = vector.load %arg6[%c0, %c0_0] : memref<1x128xf32, #tpu.memory_space<vmem>>, vector<1x128xf32>
    %c0_1 = arith.constant 0 : index
    %c0_2 = arith.constant 0 : index
    %1 = vector.load %arg2[%c0_1, %c0_2] : memref<8x16xf32, #tpu.memory_space<vmem>>, vector<8x16xf32>
    %2 = arith.truncf %1 : vector<8x16xf32> to vector<8x16xbf16>
    %c0_3 = arith.constant 0 : index
    %c0_4 = arith.constant 0 : index
    %3 = vector.load %arg4[%c0_3, %c0_4] : memref<16x128xbf16, #tpu.memory_space<vmem>>, vector<16x128xbf16>
    %cst = arith.constant dense<0.000000e+00> : vector<8x128xf32>
    %4 = tpu.matmul %2, %3, %cst {dimension_numbers = #tpu.dot_dimension_numbers<[1], [0], [0], [1], [0, 0, 1, 1], [], []>} : vector<8x16xbf16>, vector<16x128xbf16>, vector<8x128xf32> -> vector<8x128xf32>
    %5 = vector.broadcast %0 : vector<1x128xf32> to vector<8x128xf32>
    %6 = arith.addf %5, %4 : vector<8x128xf32>
    %c0_5 = arith.constant 0 : index
    %c0_6 = arith.constant 0 : index
    %7 = vector.load %arg3[%c0_5, %c0_6] : memref<8x128xf32, #tpu.memory_space<vmem>>, vector<8x128xf32>
    %8 = arith.truncf %7 : vector<8x128xf32> to vector<8x128xbf16>
    %c0_7 = arith.constant 0 : index
    %c0_8 = arith.constant 0 : index
    %9 = vector.load %arg5[%c0_7, %c0_8] : memref<128x128xbf16, #tpu.memory_space<vmem>>, vector<128x128xbf16>
    %cst_9 = arith.constant dense<0.000000e+00> : vector<8x128xf32>
    %10 = tpu.matmul %8, %9, %cst_9 {dimension_numbers = #tpu.dot_dimension_numbers<[1], [0], [0], [1], [0, 0, 1, 1], [], []>} : vector<8x128xbf16>, vector<128x128xbf16>, vector<8x128xf32> -> vector<8x128xf32>
    %11 = arith.addf %6, %10 : vector<8x128xf32>
    %12 = math.tanh %11 : vector<8x128xf32>
    %13 = arith.truncf %12 : vector<8x128xf32> to vector<8x128xbf16>
    %c0_10 = arith.constant 0 : index
    %c0_11 = arith.constant 0 : index
    %14 = vector.load %arg7[%c0_10, %c0_11] : memref<8x128xbf16, #tpu.memory_space<vmem>>, vector<8x128xbf16>
    tpu.vector_store %arg7[%c0_10, %c0_11], %13 {strides = array<i32>} : memref<8x128xbf16, #tpu.memory_space<vmem>>, vector<8x128xbf16>,
    return
  }
  func.func @transform_0(%arg0: i32, %arg1: i32) -> (i32, i32) {
    %c0_i32 = arith.constant 0 : i32
    %c0_i32_0 = arith.constant 0 : i32
    return %arg0, %c0_i32 : i32, i32
  }
  func.func @transform_1(%arg0: i32, %arg1: i32) -> (i32, i32) {
    %c0_i32 = arith.constant 0 : i32
    %c0_i32_0 = arith.constant 0 : i32
    return %arg0, %c0_i32 : i32, i32
  }
  func.func @transform_2(%arg0: i32, %arg1: i32) -> (i32, i32) {
    %c0_i32 = arith.constant 0 : i32
    %c0_i32_0 = arith.constant 0 : i32
    return %c0_i32, %arg1 : i32, i32
  }
  func.func @transform_3(%arg0: i32, %arg1: i32) -> (i32, i32) {
    %c0_i32 = arith.constant 0 : i32
    %c0_i32_0 = arith.constant 0 : i32
    return %c0_i32, %arg1 : i32, i32
  }
  func.func @transform_4(%arg0: i32, %arg1: i32) -> (i32, i32) {
    %c0_i32 = arith.constant 0 : i32
    %c0_i32_0 = arith.constant 0 : i32
    return %c0_i32, %arg1 : i32, i32
  }
  func.func @transform_5(%arg0: i32, %arg1: i32) -> (i32, i32) {
    %c0_i32 = arith.constant 0 : i32
    return %arg0, %arg1 : i32, i32
  }
}

</mosaic_0001>

<bundles_post_ra>
// kernel: tpu_custom_call.1
= control target key start
LH: loop header
LB: loop body
LE: loop exit
PB: predicated region body
PF: predicated region fallthrough
CT: control target
= control target key end

     0   :  { %10 = vsyncpa [#allocation3], 0  ;;  %s495_s0 = inlined_call_operand.hbm [shape: f32[8,16], index: 0, kind: input, shape index: {}]   ;;  %s496_s1 = inlined_call_operand.hbm [shape: f32[8,128], index: 1, kind: input, shape index: {}]   ;;  %s497_s2 = inlined_call_operand.hbm [shape: bf16[16,128], index: 2, kind: input, shape index: {}]   ;;  %s498_s3 = inlined_call_operand.hbm [shape: bf16[128,128], index: 3, kind: input, shape index: {}]   ;;  %s499_s4 = inlined_call_operand.vmem [shape: f32[1,128], index: 4, kind: input, shape index: {}]   ;;  %s500_s5 = inlined_call_operand.hbm [shape: bf16[8,128], index: 5, kind: output, shape index: {}]  }
   0x1   :  { %11 = vsyncpa [#allocation6], 0 }
   0x2   :  { %12 = vsyncpa [#allocation9], 0 }
   0x3   :  { %13 = vsyncpa [#allocation4], 0  ;;  %s438_s18 = smov [#allocation5]   ;;  %s439_s20 = smov [#allocation2]  }
   0x4   :  { %s30_s19 = sshll.u32 %s438_s18, 4  ;;  %s20_s21 = sshll.u32 %s439_s20, 4  ;;  %s31_s19 = int_to_ptr.vmem [resolvable:$true] %s30_s19  ;;  %s21_s21 = int_to_ptr.vmem [resolvable:$true] %s20_s21 }
   0x5   :  { %s338_s22 = scalar_lea.vmem %s31_s19, 128  ;;  %p343_p1 = scmp.lt.s32.totalorder %s31_s19, %s31_s19 }
   0x6   :  { %p339_p0 = scmp.ne.s32.totalorder %s31_s19, %s338_s22  ;;  %p344_p2 = scmp.lt.s32.totalorder %s338_s22, %s338_s22 }
   0x8   :  { %p345_p3 = por %p344_p2, %p343_p1 }
   0xa   :  { %p346_p4 = pnand %p345_p3, %p339_p0 }
   0xc   :  { %349 = shalt.err (!%p346_p4)
}
   0xd   :  { %33 = dma.hbm_to_vmem [thread:$0]  %s496_s1, 128, %s31_s19, [#allocation6]  }
   0xe   :  { %s358_s25 = scalar_lea.vmem %s21_s21, 128  ;;  %p363_p6 = scmp.lt.s32.totalorder %s21_s21, %s21_s21 }
   0xf   :  { %p359_p5 = scmp.ne.s32.totalorder %s21_s21, %s358_s25  ;;  %p364_p7 = scmp.lt.s32.totalorder %s358_s25, %s358_s25 }
  0x11   :  { %p365_p8 = por %p364_p7, %p363_p6 }
  0x13   :  { %p366_p9 = pnand %p365_p8, %p359_p5 }
  0x15   :  { %369 = shalt.err (!%p366_p9)
}
  0x16   :  { %23 = dma.hbm_to_vmem [thread:$0]  %s495_s0, 128, %s21_s21, [#allocation3]  }
  0x17   :  { %s440_s28 = smov [#allocation7]  }
  0x18   :  { %s39_s29 = sshll.u32 %s440_s28, 4  ;;  %s40_s29 = int_to_ptr.vmem [resolvable:$true] %s39_s29 }
  0x19   :  { %s378_s30 = scalar_lea.vmem %s40_s29, 128  ;;  %p383_p11 = scmp.lt.s32.totalorder %s40_s29, %s40_s29 }
  0x1a   :  { %p379_p10 = scmp.ne.s32.totalorder %s40_s29, %s378_s30  ;;  %p384_p12 = scmp.lt.s32.totalorder %s378_s30, %s378_s30 }
  0x1c   :  { %p385_p13 = por %p384_p12, %p383_p11 }
  0x1e   :  { %p386_p0 = pnand %p385_p13, %p379_p10 }
  0x20   :  { %389 = shalt.err (!%p386_p0)
}
  0x21   :  { %s441_s1 = smov 64   ;;  %s442_s6 = smov 4  }
  0x22   :  { %45 = dma.hbm_to_vmem [thread:$0]  %s497_s2, 128, %s40_s29, [#allocation6], %s441_s1, %s441_s1, %s442_s6  }
  0x23   :  { %s443_s9 = smov [#allocation8]  }
  0x24   :  { %s51_s10 = sshll.u32 %s443_s9, 4  ;;  %s52_s10 = int_to_ptr.vmem [resolvable:$true] %s51_s10 }
  0x25   :  { %s398_s0 = scalar_lea.vmem %s52_s10, 1024  ;;  %p403_p2 = scmp.lt.s32.totalorder %s52_s10, %s52_s10 }
  0x26   :  { %p399_p1 = scmp.ne.s32.totalorder %s52_s10, %s398_s0  ;;  %p404_p3 = scmp.lt.s32.totalorder %s398_s0, %s398_s0 }
  0x28   :  { %p405_p4 = por %p404_p3, %p403_p2 }
  0x2a   :  { %p406_p5 = pnand %p405_p4, %p399_p1 }
  0x2c   :  { %409 = shalt.err (!%p406_p5)
}
  0x2d   :  { %57 = dma.hbm_to_vmem [thread:$0]  %s498_s3, 1024, %s52_s10, [#allocation9], %s441_s1, %s441_s1, %s442_s6  }
  0x2e   :  { %430 = dma.done.wait [#allocation3], 128  }
  0x2f   :  { %431 = vsyncadd [#allocation3], 4294967168 }
  0x30   :  { %432 = dma.done.wait [#allocation6], 256  }
  0x31   :  { %433 = vsyncadd [#allocation6], 4294967040 }
  0x32   :  { %434 = dma.done.wait [#allocation9], 1024  }
  0x33   :  { %435 = vsyncadd [#allocation9], 4294966272  ;;  %v444_v0 = vmov 0.0   ;;  %vm445_vm0 = vmmov 0   ;;  %v319_v1 = vld [vmem:[#allocation8 + $0x38] sm:$0xff]   ;;  %v320_v2 = vld [vmem:[#allocation8 + $0x30] sm:$0xff]  }
  0x34   :  { %290 = vmatprep.subr.bf16.mxu1 %v444_v0  ;;  %284 = vmatprep.subr.bf16.mxu0 %v444_v0  ;;  %v324_v3 = vld [vmem:[#allocation7] sm:$0xff]   ;;  %v321_v4 = vld [vmem:[#allocation8 + $0x28] sm:$0xff]   ;;  %vm84_vm1 = vcmask 130048   ;;  %v322_v7 = vld [vmem:[#allocation8 + $0x20] sm:$0xff]   ;;  %s446_s13 = smov [#allocation10]  }
  0x35   :  { %286 = vmatprep.mubr.msk.bf16.mxu0 %vm445_vm0, %v444_v0  ;;  %306 = vmatprep.mubr.msk.bf16.mxu1 %vm445_vm0, %v444_v0  ;;  %v74_v5 = vld [vmem:[#allocation2] sm:$0xff]  ;;  %v323_v8 = vld [vmem:[#allocation8 + $0x18] sm:$0xff]   ;;  %v325_v9 = vld [vmem:[#allocation8 + $0x10] sm:$0xff]   ;;  %s251_s14 = sshll.u32 %s446_s13, 4  ;;  %s252_s14 = int_to_ptr.vmem [resolvable:$true] %s251_s14 }
  0x36   :  { %291 = vmatpush3.bf16.msra.mxu1 %v319_v1  ;;  %285 = vmatpush3.bf16.msra.mxu0 %v324_v3  ;;  %v75_v6 = vpack.c.bf16 %v74_v5, %v74_v5  ;;  %v326_v10 = vld [vmem:[#allocation8 + $0x8] sm:$0xff]   ;;  %v327_v11 = vld [vmem:[#allocation8] sm:$0xff]   ;;  %v135_v12 = vld [vmem:[#allocation5] sm:$0xff]  ;;  %s410_s15 = scalar_lea.vmem %s252_s14, 64  ;;  %p415_p7 = scmp.lt.s32.totalorder %s252_s14, %s252_s14 }
  0x37   :  { %292 = vmatprep.subr.bf16.mxu1 %v444_v0  ;;  %v136_v13 = vpack.c.bf16 %v135_v12, %v135_v12  ;;  %v264_v18 = vld [vmem:[%s499_s4] ss:$0 sm:$0xff]  ;;  %p411_p6 = scmp.ne.s32.totalorder %s252_s14, %s410_s15  ;;  %p416_p8 = scmp.lt.s32.totalorder %s410_s15, %s410_s15 }
  0x39   :  { %287 = vmatmul.mubr.msk.bf16.vlgmr.msra.gmra.mxu0 %vm84_vm1, %v75_v6  ;;  %p417_p9 = por %p416_p8, %p415_p7 }
  0x3a   :  { %293 = vmatpush3.bf16.msra.mxu1 %v320_v2 }
  0x3b   :  { %294 = vmatprep.subr.bf16.mxu1 %v444_v0  ;;  %p418_p10 = pnand %p417_p9, %p411_p6 }
  0x3e   :  { %295 = vmatpush3.bf16.msra.mxu1 %v321_v4 }
  0x3f   :  { %296 = vmatprep.subr.bf16.mxu1 %v444_v0 }
  0x42   :  { %297 = vmatpush3.bf16.msra.mxu1 %v322_v7 }
  0x43   :  { %298 = vmatprep.subr.bf16.mxu1 %v444_v0 }
  0x46   :  { %299 = vmatpush3.bf16.msra.mxu1 %v323_v8 }
  0x47   :  { %300 = vmatprep.subr.bf16.mxu1 %v444_v0 }
  0x4a   :  { %301 = vmatpush3.bf16.msra.mxu1 %v325_v9 }
  0x4b   :  { %302 = vmatprep.subr.bf16.mxu1 %v444_v0 }
  0x4e   :  { %303 = vmatpush3.bf16.msra.mxu1 %v326_v10 }
  0x4f   :  { %304 = vmatprep.subr.bf16.mxu1 %v444_v0 }
  0x52   :  { %305 = vmatpush3.bf16.msra.mxu1 %v327_v11 }
  0x55   :  { %307 = vmatmul.mubr.bf16.vlgmr.msra.gmra.mxu1 %v136_v13 }
  0xf9   :  { %v122_v14 = vpop.f32.mrf.mxu0 }
  0xfa   :  { %v134_v19 = vadd.f32 %v264_v18, %v122_v14 }
  0xfb   :  { %v288_v15 = vpop.f32.mrf.mxu0 }
  0xfd   :  { %v125_v16 = vpop.f32.mrf.mxu0 }
  0xff   :  { %v289_v17 = vpop.f32.mrf.mxu0 }
 0x115   :  { %v235_v20 = vpop.f32.mrf.mxu1 }
 0x116   :  { %v241_v21 = vadd.f32 %v235_v20, %v134_v19 }
 0x117   :  { %v308_v22 = vpop.f32.mrf.mxu1 }
 0x118   :  { %328 = vtanh.f32 %v241_v21 }
 0x119   :  { %v238_v23 = vpop.f32.mrf.mxu1 }
 0x11b   :  { %v309_v24 = vpop.f32.mrf.mxu1 }
 0x125   :  { %v329_v25 = vpop.eup %328 }
 0x126   :  { %v243_v26 = vpack.c.bf16 %v329_v25, %v329_v25 }
 0x128   :  { %244 = vst [vmem:[#allocation10] sm:$0xf] %v243_v26 }
 0x129   :  { %421 = shalt.err (!%p418_p10)
}
 0x12a   :  { %254 = dma.vmem_to_hbm [thread:$0]  %s252_s14, 64, %s500_s5, [#allocation4]  }
 0x12b   :  { %436 = dma.done.wait [#allocation4], 64  }
 0x12c   :  { %437 = vsyncadd [#allocation4], 4294967232 }
 0x12d   :  { %258 = vsyncpa [#allocation3], 1 }
 0x12e   :  { %259 = vsyncpa [#allocation6], 1 }
 0x12f   :  { %260 = vsyncpa [#allocation9], 1 }
 0x130   :  { %261 = vsyncpa [#allocation4], 1 }

</bundles_post_ra>
